<compile_context>
chip_gen: v5e
topology: v5e:2x2
jax: 0.10.0
libtpu: 0.0.40
codegen_flags: <defaults>
</compile_context>

<pallas_src>
import functools

import jax
import jax.numpy as jnp
from jax import lax
from jax.experimental import pallas as pl
from jax.experimental.pallas import tpu as pltpu

BN_EPS = 1e-5
LANE = 128
NEG_BIG = -1e30  # bias for padded cluster columns -> exp() underflows to 0


def _round_up(n, m):
    return (n + m - 1) // m * m


def _gelu_exact(x):
    # nn.GELU() default: 0.5 * x * (1 + erf(x / sqrt(2)))
    return 0.5 * x * (1.0 + lax.erf(x * 0.7071067811865476))


# ----------------------------- pass 1: encoder ------------------------------ #
def _encoder_kernel(x_ref, w1_ref, b1_ref, w2_ref, b2_ref, w3_ref, b3_ref,
                    h3_ref, stats_ref, *, batch, tile_b):
    x = x_ref[...]                                           # bf16 (tile_b, K_pad)
    h = _gelu_exact(jnp.dot(x, w1_ref[...],
                            preferred_element_type=jnp.float32) + b1_ref[...])
    h = _gelu_exact(jnp.dot(h.astype(jnp.bfloat16), w2_ref[...],
                            preferred_element_type=jnp.float32) + b2_ref[...])
    h = _gelu_exact(jnp.dot(h.astype(jnp.bfloat16), w3_ref[...],
                            preferred_element_type=jnp.float32) + b3_ref[...])
    h3_ref[...] = h.astype(h3_ref.dtype)                     # pre-BN activations (f32)

    # Masked per-tile partial sums so full-batch BN stats are exact even when
    # the batch is padded to a tile multiple.
    nf = h.shape[1]
    row = (lax.broadcasted_iota(jnp.int32, (tile_b, nf), 0)
           + pl.program_id(0) * tile_b)
    mask = (row < batch).astype(jnp.float32)
    hm = h * mask
    s = jnp.sum(hm, axis=0, keepdims=True)                   # (1, nf)  sum(h)
    sq = jnp.sum(hm * h, axis=0, keepdims=True)              # (1, nf)  sum(h^2)
    ridx = lax.broadcasted_iota(jnp.int32, (8, nf), 0)
    stats_ref[...] = jnp.where(ridx == 0, s,
                               jnp.where(ridx == 1, sq, 0.0))


# --------------------- pass 2: BN normalize + head + softmax ---------------- #
def _head_kernel(h3_ref, scale_ref, shift_ref, w4_ref, b4_ref,
                 out_ref, hidden_ref):
    hidden = h3_ref[...] * scale_ref[...] + shift_ref[...]   # f32 BatchNorm output
    hidden_ref[...] = hidden.astype(hidden_ref.dtype)
    logits = jnp.dot(hidden.astype(jnp.bfloat16), w4_ref[...],
                     preferred_element_type=jnp.float32) + b4_ref[...]
    logits = logits - jnp.max(logits, axis=1, keepdims=True)
    e = jnp.exp(logits)                                      # padded cols -> exactly 0
    denom = jnp.sum(e, axis=1, keepdims=True)
    out_ref[...] = (e * pl.reciprocal(denom, approx=True)).astype(out_ref.dtype)


# --------------------------------- wrapper ---------------------------------- #
def ddc_forward(x, params):
    """x: (B, input_dim) f32. params: dict of f32 weights already (in, out)."""
    B, input_dim = x.shape
    n_features = params["w2"].shape[0]
    n_clusters = params["w4"].shape[1]

    K_pad = _round_up(input_dim, LANE)
    F_pad = _round_up(n_features, LANE)
    C_pad = _round_up(n_clusters, LANE)
    tile_b = min(512, _round_up(B, 16))
    B_pad = _round_up(B, tile_b)
    nt = B_pad // tile_b

    def pad2(a, r, c, v=0.0):
        return jnp.pad(a, ((0, r - a.shape[0]), (0, c - a.shape[1])),
                       constant_values=v)

    xp = pad2(x, B_pad, K_pad).astype(jnp.bfloat16)
    w1 = pad2(params["w1"], K_pad, F_pad).astype(jnp.bfloat16)
    w2 = pad2(params["w2"], F_pad, F_pad).astype(jnp.bfloat16)
    w3 = pad2(params["w3"], F_pad, F_pad).astype(jnp.bfloat16)
    w4 = pad2(params["w4"], F_pad, C_pad).astype(jnp.bfloat16)
    b1 = pad2(params["b1"], 1, F_pad)
    b2 = pad2(params["b2"], 1, F_pad)
    b3 = pad2(params["b3"], 1, F_pad)
    b4 = pad2(params["b4"], 1, C_pad, NEG_BIG)
    gamma = pad2(params["gamma"], 1, F_pad, 1.0)
    beta = pad2(params["beta"], 1, F_pad, 0.0)

    def full(a):
        return pl.BlockSpec(a.shape, lambda i, _nd=a.ndim: (0,) * _nd)

    cparams = pltpu.CompilerParams(
        dimension_semantics=("parallel",),
        vmem_limit_bytes=32 * 1024 * 1024)

    # ---- pass 1: encoder (3x Linear+GELU) + per-tile BN partial sums ----
    enc = functools.partial(_encoder_kernel, batch=B, tile_b=tile_b)
    h3, stats = pl.pallas_call(
        enc,
        out_shape=(jax.ShapeDtypeStruct((B_pad, F_pad), jnp.float32),
                   jax.ShapeDtypeStruct((nt * 8, F_pad), jnp.float32)),
        grid=(nt,),
        in_specs=[pl.BlockSpec((tile_b, K_pad), lambda i: (i, 0)),
                  full(w1), full(b1), full(w2), full(b2), full(w3), full(b3)],
        out_specs=(pl.BlockSpec((tile_b, F_pad), lambda i: (i, 0)),
                   pl.BlockSpec((8, F_pad), lambda i: (i, 0))),
        compiler_params=cparams,
    )(xp, w1, b1, w2, b2, w3, b3)

    # ---- tiny cross-tile reduction for full-batch BN statistics (XLA) ----
    stats = stats.reshape(nt, 8, F_pad)
    mean = jnp.sum(stats[:, 0, :], axis=0, keepdims=True) / B
    ex2 = jnp.sum(stats[:, 1, :], axis=0, keepdims=True) / B
    var = jnp.maximum(ex2 - mean * mean, 0.0)        # biased var (training-mode BN)
    scale = gamma * lax.rsqrt(var + BN_EPS)
    shift = beta - mean * scale

    # ---- pass 2: normalize + output Linear + Softmax ----
    out_p, hidden_p = pl.pallas_call(
        _head_kernel,
        out_shape=(jax.ShapeDtypeStruct((B_pad, C_pad), jnp.float32),
                   jax.ShapeDtypeStruct((B_pad, F_pad), jnp.float32)),
        grid=(nt,),
        in_specs=[pl.BlockSpec((tile_b, F_pad), lambda i: (i, 0)),
                  full(scale), full(shift), full(w4), full(b4)],
        out_specs=(pl.BlockSpec((tile_b, C_pad), lambda i: (i, 0)),
                   pl.BlockSpec((tile_b, F_pad), lambda i: (i, 0))),
        compiler_params=cparams,
    )(h3, scale, shift, w4, b4)

    return out_p[:B, :n_clusters], hidden_p[:B, :n_features]


# ------------------------------ reference / init ---------------------------- #
def _reference(x, p):
    g = lambda t: 0.5 * t * (1.0 + lax.erf(t * 0.7071067811865476))
    h = g(x @ p["w1"] + p["b1"])
    h = g(h @ p["w2"] + p["b2"])
    h = g(h @ p["w3"] + p["b3"])
    mean = jnp.mean(h, axis=0, keepdims=True)
    var = jnp.mean((h - mean) ** 2, axis=0, keepdims=True)
    hidden = p["gamma"] * (h - mean) * lax.rsqrt(var + BN_EPS) + p["beta"]
    logits = hidden @ p["w4"] + p["b4"]
    return jax.nn.softmax(logits, axis=1), hidden


def init_params(key, input_dim, n_clusters, n_features):
    """Deterministic synthetic init (PyTorch-style uniform fan-in bounds)."""
    ks = jax.random.split(key, 8)

    def linear(kw, kb, fan_in, fan_out):
        bound = 1.0 / jnp.sqrt(fan_in)
        w = jax.random.uniform(kw, (fan_in, fan_out), jnp.float32, -bound, bound)
        b = jax.random.uniform(kb, (1, fan_out), jnp.float32, -bound, bound)
        return w, b

    w1, b1 = linear(ks[0], ks[1], input_dim, n_features)
    w2, b2 = linear(ks[2], ks[3], n_features, n_features)
    w3, b3 = linear(ks[4], ks[5], n_features, n_features)
    w4, b4 = linear(ks[6], ks[7], n_features, n_clusters)
    gamma = jnp.ones((1, n_features), jnp.float32)   # BatchNorm1d default weight
    beta = jnp.zeros((1, n_features), jnp.float32)   # BatchNorm1d default bias
    return dict(w1=w1, b1=b1, w2=w2, b2=b2, w3=w3, b3=b3,
                gamma=gamma, beta=beta, w4=w4, b4=b4)


if __name__ == "__main__":
    input_dim, n_clusters, n_features = 32, 4, 128
    batch = 8

    key = jax.random.PRNGKey(0)
    kx, kp = jax.random.split(key)
    x = jax.random.normal(kx, (batch, input_dim), jnp.float32)
    params = init_params(kp, input_dim, n_clusters, n_features)

    output, hidden = jax.jit(ddc_forward)(x, params)
    jax.block_until_ready((output, hidden))

    assert output.shape == (batch, n_clusters)
    assert hidden.shape == (batch, n_features)
    # softmax rows sum to 1 (approx reciprocal -> loose tolerance)
    assert bool(jnp.allclose(jnp.sum(output, axis=1), 1.0, atol=5e-3))

    # compare against a pure-f32 JAX reference (kernel uses bf16 MXU operands)
    ref_out, ref_hidden = _reference(x, params)
    assert bool(jnp.max(jnp.abs(output - ref_out)) < 5e-2)
    assert bool(jnp.max(jnp.abs(hidden - ref_hidden)) < 2e-1)

    print("KERNEL_OK")
</pallas_src>

<mosaic_0001>
module attributes {stable_mosaic.version = 11 : i64} {
  func.func @_encoder_kernel(%arg0: i32, %arg1: memref<16x128xbf16, #tpu.memory_space<vmem>>, %arg2: memref<128x128xbf16, #tpu.memory_space<vmem>>, %arg3: memref<1x128xf32, #tpu.memory_space<vmem>>, %arg4: memref<128x128xbf16, #tpu.memory_space<vmem>>, %arg5: memref<1x128xf32, #tpu.memory_space<vmem>>, %arg6: memref<128x128xbf16, #tpu.memory_space<vmem>>, %arg7: memref<1x128xf32, #tpu.memory_space<vmem>>, %arg8: memref<16x128xf32, #tpu.memory_space<vmem>>, %arg9: memref<8x128xf32, #tpu.memory_space<vmem>>) attributes {dimension_semantics = [#tpu.dimension_semantics<parallel>], iteration_bounds = array<i64: 1>, scalar_prefetch = 0 : i64, scratch_operands = 0 : i64, tpu.core_type = #tpu.core_type<tc>, window_params = [{transform_indices = @transform_0, window_bounds = array<i64: 16, 128>}, {pipeline_mode = #tpu.pipeline_mode<synchronous>, transform_indices = @transform_1, window_bounds = array<i64: 128, 128>}, {pipeline_mode = #tpu.pipeline_mode<synchronous>, transform_indices = @transform_2, window_bounds = array<i64: 1, 128>}, {pipeline_mode = #tpu.pipeline_mode<synchronous>, transform_indices = @transform_3, window_bounds = array<i64: 128, 128>}, {pipeline_mode = #tpu.pipeline_mode<synchronous>, transform_indices = @transform_4, window_bounds = array<i64: 1, 128>}, {pipeline_mode = #tpu.pipeline_mode<synchronous>, transform_indices = @transform_5, window_bounds = array<i64: 128, 128>}, {pipeline_mode = #tpu.pipeline_mode<synchronous>, transform_indices = @transform_6, window_bounds = array<i64: 1, 128>}, {transform_indices = @transform_7, window_bounds = array<i64: 16, 128>}, {transform_indices = @transform_8, window_bounds = array<i64: 8, 128>}]} {
    %c0 = arith.constant 0 : index
    %c0_0 = arith.constant 0 : index
    %0 = vector.load %arg1[%c0, %c0_0] : memref<16x128xbf16, #tpu.memory_space<vmem>>, vector<16x128xbf16>
    %c0_1 = arith.constant 0 : index
    %c0_2 = arith.constant 0 : index
    %1 = vector.load %arg2[%c0_1, %c0_2] : memref<128x128xbf16, #tpu.memory_space<vmem>>, vector<128x128xbf16>
    %cst = arith.constant dense<0.000000e+00> : vector<16x128xf32>
    %2 = tpu.matmul %0, %1, %cst {dimension_numbers = #tpu.dot_dimension_numbers<[1], [0], [0], [1], [0, 0, 1, 1], [], []>} : vector<16x128xbf16>, vector<128x128xbf16>, vector<16x128xf32> -> vector<16x128xf32>
    %c0_3 = arith.constant 0 : index
    %c0_4 = arith.constant 0 : index
    %3 = vector.load %arg3[%c0_3, %c0_4] : memref<1x128xf32, #tpu.memory_space<vmem>>, vector<1x128xf32>
    %4 = vector.broadcast %3 : vector<1x128xf32> to vector<16x128xf32>
    %5 = arith.addf %2, %4 : vector<16x128xf32>
    %cst_5 = arith.constant 5.000000e-01 : f32
    %6 = vector.broadcast %cst_5 : f32 to vector<16x128xf32>
    %7 = arith.mulf %6, %5 : vector<16x128xf32>
    %cst_6 = arith.constant 0.707106769 : f32
    %8 = vector.broadcast %cst_6 : f32 to vector<16x128xf32>
    %9 = arith.mulf %5, %8 : vector<16x128xf32>
    %10 = math.erf %9 : vector<16x128xf32>
    %cst_7 = arith.constant 1.000000e+00 : f32
    %11 = vector.broadcast %cst_7 : f32 to vector<16x128xf32>
    %12 = arith.addf %11, %10 : vector<16x128xf32>
    %13 = arith.mulf %7, %12 : vector<16x128xf32>
    %14 = arith.truncf %13 : vector<16x128xf32> to vector<16x128xbf16>
    %c0_8 = arith.constant 0 : index
    %c0_9 = arith.constant 0 : index
    %15 = vector.load %arg4[%c0_8, %c0_9] : memref<128x128xbf16, #tpu.memory_space<vmem>>, vector<128x128xbf16>
    %cst_10 = arith.constant dense<0.000000e+00> : vector<16x128xf32>
    %16 = tpu.matmul %14, %15, %cst_10 {dimension_numbers = #tpu.dot_dimension_numbers<[1], [0], [0], [1], [0, 0, 1, 1], [], []>} : vector<16x128xbf16>, vector<128x128xbf16>, vector<16x128xf32> -> vector<16x128xf32>
    %c0_11 = arith.constant 0 : index
    %c0_12 = arith.constant 0 : index
    %17 = vector.load %arg5[%c0_11, %c0_12] : memref<1x128xf32, #tpu.memory_space<vmem>>, vector<1x128xf32>
    %18 = vector.broadcast %17 : vector<1x128xf32> to vector<16x128xf32>
    %19 = arith.addf %16, %18 : vector<16x128xf32>
    %cst_13 = arith.constant 5.000000e-01 : f32
    %20 = vector.broadcast %cst_13 : f32 to vector<16x128xf32>
    %21 = arith.mulf %20, %19 : vector<16x128xf32>
    %cst_14 = arith.constant 0.707106769 : f32
    %22 = vector.broadcast %cst_14 : f32 to vector<16x128xf32>
    %23 = arith.mulf %19, %22 : vector<16x128xf32>
    %24 = math.erf %23 : vector<16x128xf32>
    %cst_15 = arith.constant 1.000000e+00 : f32
    %25 = vector.broadcast %cst_15 : f32 to vector<16x128xf32>
    %26 = arith.addf %25, %24 : vector<16x128xf32>
    %27 = arith.mulf %21, %26 : vector<16x128xf32>
    %28 = arith.truncf %27 : vector<16x128xf32> to vector<16x128xbf16>
    %c0_16 = arith.constant 0 : index
    %c0_17 = arith.constant 0 : index
    %29 = vector.load %arg6[%c0_16, %c0_17] : memref<128x128xbf16, #tpu.memory_space<vmem>>, vector<128x128xbf16>
    %cst_18 = arith.constant dense<0.000000e+00> : vector<16x128xf32>
    %30 = tpu.matmul %28, %29, %cst_18 {dimension_numbers = #tpu.dot_dimension_numbers<[1], [0], [0], [1], [0, 0, 1, 1], [], []>} : vector<16x128xbf16>, vector<128x128xbf16>, vector<16x128xf32> -> vector<16x128xf32>
    %c0_19 = arith.constant 0 : index
    %c0_20 = arith.constant 0 : index
    %31 = vector.load %arg7[%c0_19, %c0_20] : memref<1x128xf32, #tpu.memory_space<vmem>>, vector<1x128xf32>
    %32 = vector.broadcast %31 : vector<1x128xf32> to vector<16x128xf32>
    %33 = arith.addf %30, %32 : vector<16x128xf32>
    %cst_21 = arith.constant 5.000000e-01 : f32
    %34 = vector.broadcast %cst_21 : f32 to vector<16x128xf32>
    %35 = arith.mulf %34, %33 : vector<16x128xf32>
    %cst_22 = arith.constant 0.707106769 : f32
    %36 = vector.broadcast %cst_22 : f32 to vector<16x128xf32>
    %37 = arith.mulf %33, %36 : vector<16x128xf32>
    %38 = math.erf %37 : vector<16x128xf32>
    %cst_23 = arith.constant 1.000000e+00 : f32
    %39 = vector.broadcast %cst_23 : f32 to vector<16x128xf32>
    %40 = arith.addf %39, %38 : vector<16x128xf32>
    %41 = arith.mulf %35, %40 : vector<16x128xf32>
    %c0_24 = arith.constant 0 : index
    %c0_25 = arith.constant 0 : index
    %42 = vector.load %arg8[%c0_24, %c0_25] : memref<16x128xf32, #tpu.memory_space<vmem>>, vector<16x128xf32>
    tpu.vector_store %arg8[%c0_24, %c0_25], %41 {strides = array<i32>} : memref<16x128xf32, #tpu.memory_space<vmem>>, vector<16x128xf32>,
    %43 = tpu.iota {dimensions = array<i32: 0>} : vector<16x128xi32>
    %c16_i32 = arith.constant 16 : i32
    %44 = arith.muli %arg0, %c16_i32 : i32
    %45 = vector.broadcast %44 : i32 to vector<16x128xi32>
    %46 = arith.addi %43, %45 : vector<16x128xi32>
    %c8_i32 = arith.constant 8 : i32
    %47 = vector.broadcast %c8_i32 : i32 to vector<16x128xi32>
    %48 = arith.cmpi slt, %46, %47 : vector<16x128xi32>
    %49 = arith.extui %48 : vector<16x128xi1> to vector<16x128xi32>
    %50 = arith.sitofp %49 : vector<16x128xi32> to vector<16x128xf32>
    %51 = arith.mulf %41, %50 : vector<16x128xf32>
    %cst_26 = arith.constant dense<0.000000e+00> : vector<128xf32>
    %52 = vector.multi_reduction <add>, %51, %cst_26 [0] : vector<16x128xf32> to vector<128xf32>
    %53 = vector.shape_cast %52 : vector<128xf32> to vector<1x128xf32>
    %54 = arith.mulf %51, %41 : vector<16x128xf32>
    %cst_27 = arith.constant dense<0.000000e+00> : vector<128xf32>
    %55 = vector.multi_reduction <add>, %54, %cst_27 [0] : vector<16x128xf32> to vector<128xf32>
    %56 = vector.shape_cast %55 : vector<128xf32> to vector<1x128xf32>
    %57 = tpu.iota {dimensions = array<i32: 0>} : vector<8x128xi32>
    %c0_i32 = arith.constant 0 : i32
    %58 = vector.broadcast %c0_i32 : i32 to vector<8x128xi32>
    %59 = arith.cmpi eq, %57, %58 : vector<8x128xi32>
    %c1_i32 = arith.constant 1 : i32
    %60 = vector.broadcast %c1_i32 : i32 to vector<8x128xi32>
    %61 = arith.cmpi eq, %57, %60 : vector<8x128xi32>
    %cst_28 = arith.constant 0.000000e+00 : f32
    %62 = vector.shape_cast %56 : vector<1x128xf32> to vector<1x128xf32>
    %63 = vector.broadcast %62 : vector<1x128xf32> to vector<8x128xf32>
    %64 = vector.broadcast %cst_28 : f32 to vector<8x128xf32>
    %65 = arith.select %61, %63, %64 : vector<8x128xi1>, vector<8x128xf32>
    %66 = vector.shape_cast %53 : vector<1x128xf32> to vector<1x128xf32>
    %67 = vector.broadcast %66 : vector<1x128xf32> to vector<8x128xf32>
    %68 = arith.select %59, %67, %65 : vector<8x128xi1>, vector<8x128xf32>
    %c0_29 = arith.constant 0 : index
    %c0_30 = arith.constant 0 : index
    %69 = vector.load %arg9[%c0_29, %c0_30] : memref<8x128xf32, #tpu.memory_space<vmem>>, vector<8x128xf32>
    tpu.vector_store %arg9[%c0_29, %c0_30], %68 {strides = array<i32>} : memref<8x128xf32, #tpu.memory_space<vmem>>, vector<8x128xf32>,
    return
  }
  func.func @transform_0(%arg0: i32) -> (i32, i32) {
    %c0_i32 = arith.constant 0 : i32
    %c0_i32_0 = arith.constant 0 : i32
    return %arg0, %c0_i32 : i32, i32
  }
  func.func @transform_1(%arg0: i32) -> (i32, i32) {
    %c0_i32 = arith.constant 0 : i32
    %c0_i32_0 = arith.constant 0 : i32
    %c0_i32_1 = arith.constant 0 : i32
    return %c0_i32, %c0_i32_0 : i32, i32
  }
  func.func @transform_2(%arg0: i32) -> (i32, i32) {
    %c0_i32 = arith.constant 0 : i32
    %c0_i32_0 = arith.constant 0 : i32
    %c0_i32_1 = arith.constant 0 : i32
    return %c0_i32, %c0_i32_0 : i32, i32
  }
  func.func @transform_3(%arg0: i32) -> (i32, i32) {
    %c0_i32 = arith.constant 0 : i32
    %c0_i32_0 = arith.constant 0 : i32
    %c0_i32_1 = arith.constant 0 : i32
    return %c0_i32, %c0_i32_0 : i32, i32
  }
  func.func @transform_4(%arg0: i32) -> (i32, i32) {
    %c0_i32 = arith.constant 0 : i32
    %c0_i32_0 = arith.constant 0 : i32
    %c0_i32_1 = arith.constant 0 : i32
    return %c0_i32, %c0_i32_0 : i32, i32
  }
  func.func @transform_5(%arg0: i32) -> (i32, i32) {
    %c0_i32 = arith.constant 0 : i32
    %c0_i32_0 = arith.constant 0 : i32
    %c0_i32_1 = arith.constant 0 : i32
    return %c0_i32, %c0_i32_0 : i32, i32
  }
  func.func @transform_6(%arg0: i32) -> (i32, i32) {
    %c0_i32 = arith.constant 0 : i32
    %c0_i32_0 = arith.constant 0 : i32
    %c0_i32_1 = arith.constant 0 : i32
    return %c0_i32, %c0_i32_0 : i32, i32
  }
  func.func @transform_7(%arg0: i32) -> (i32, i32) {
    %c0_i32 = arith.constant 0 : i32
    %c0_i32_0 = arith.constant 0 : i32
    return %arg0, %c0_i32 : i32, i32
  }
  func.func @transform_8(%arg0: i32) -> (i32, i32) {
    %c0_i32 = arith.constant 0 : i32
    %c0_i32_0 = arith.constant 0 : i32
    return %arg0, %c0_i32 : i32, i32
  }
}

module attributes {stable_mosaic.version = 11 : i64} {
  func.func @_head_kernel(%arg0: i32, %arg1: memref<16x128xf32, #tpu.memory_space<vmem>>, %arg2: memref<1x128xf32, #tpu.memory_space<vmem>>, %arg3: memref<1x128xf32, #tpu.memory_space<vmem>>, %arg4: memref<128x128xbf16, #tpu.memory_space<vmem>>, %arg5: memref<1x128xf32, #tpu.memory_space<vmem>>, %arg6: memref<16x128xf32, #tpu.memory_space<vmem>>, %arg7: memref<16x128xf32, #tpu.memory_space<vmem>>) attributes {dimension_semantics = [#tpu.dimension_semantics<parallel>], iteration_bounds = array<i64: 1>, scalar_prefetch = 0 : i64, scratch_operands = 0 : i64, tpu.core_type = #tpu.core_type<tc>, window_params = [{transform_indices = @transform_0, window_bounds = array<i64: 16, 128>}, {pipeline_mode = #tpu.pipeline_mode<synchronous>, transform_indices = @transform_1, window_bounds = array<i64: 1, 128>}, {pipeline_mode = #tpu.pipeline_mode<synchronous>, transform_indices = @transform_2, window_bounds = array<i64: 1, 128>}, {pipeline_mode = #tpu.pipeline_mode<synchronous>, transform_indices = @transform_3, window_bounds = array<i64: 128, 128>}, {pipeline_mode = #tpu.pipeline_mode<synchronous>, transform_indices = @transform_4, window_bounds = array<i64: 1, 128>}, {transform_indices = @transform_5, window_bounds = array<i64: 16, 128>}, {transform_indices = @transform_6, window_bounds = array<i64: 16, 128>}]} {
    %c0 = arith.constant 0 : index
    %c0_0 = arith.constant 0 : index
    %0 = vector.load %arg1[%c0, %c0_0] : memref<16x128xf32, #tpu.memory_space<vmem>>, vector<16x128xf32>
    %c0_1 = arith.constant 0 : index
    %c0_2 = arith.constant 0 : index
    %1 = vector.load %arg2[%c0_1, %c0_2] : memref<1x128xf32, #tpu.memory_space<vmem>>, vector<1x128xf32>
    %2 = vector.broadcast %1 : vector<1x128xf32> to vector<16x128xf32>
    %3 = arith.mulf %0, %2 : vector<16x128xf32>
    %c0_3 = arith.constant 0 : index
    %c0_4 = arith.constant 0 : index
    %4 = vector.load %arg3[%c0_3, %c0_4] : memref<1x128xf32, #tpu.memory_space<vmem>>, vector<1x128xf32>
    %5 = vector.broadcast %4 : vector<1x128xf32> to vector<16x128xf32>
    %6 = arith.addf %3, %5 : vector<16x128xf32>
    %c0_5 = arith.constant 0 : index
    %c0_6 = arith.constant 0 : index
    %7 = vector.load %arg7[%c0_5, %c0_6] : memref<16x128xf32, #tpu.memory_space<vmem>>, vector<16x128xf32>
    tpu.vector_store %arg7[%c0_5, %c0_6], %6 {strides = array<i32>} : memref<16x128xf32, #tpu.memory_space<vmem>>, vector<16x128xf32>,
    %8 = arith.truncf %6 : vector<16x128xf32> to vector<16x128xbf16>
    %c0_7 = arith.constant 0 : index
    %c0_8 = arith.constant 0 : index
    %9 = vector.load %arg4[%c0_7, %c0_8] : memref<128x128xbf16, #tpu.memory_space<vmem>>, vector<128x128xbf16>
    %cst = arith.constant dense<0.000000e+00> : vector<16x128xf32>
    %10 = tpu.matmul %8, %9, %cst {dimension_numbers = #tpu.dot_dimension_numbers<[1], [0], [0], [1], [0, 0, 1, 1], [], []>} : vector<16x128xbf16>, vector<128x128xbf16>, vector<16x128xf32> -> vector<16x128xf32>
    %c0_9 = arith.constant 0 : index
    %c0_10 = arith.constant 0 : index
    %11 = vector.load %arg5[%c0_9, %c0_10] : memref<1x128xf32, #tpu.memory_space<vmem>>, vector<1x128xf32>
    %12 = vector.broadcast %11 : vector<1x128xf32> to vector<16x128xf32>
    %13 = arith.addf %10, %12 : vector<16x128xf32>
    %cst_11 = arith.constant dense<0xFF800000> : vector<16xf32>
    %14 = vector.multi_reduction <maximumf>, %13, %cst_11 [1] : vector<16x128xf32> to vector<16xf32>
    %15 = vector.shape_cast %14 : vector<16xf32> to vector<16x1xf32>
    %16 = vector.broadcast %15 : vector<16x1xf32> to vector<16x128xf32>
    %17 = arith.subf %13, %16 : vector<16x128xf32>
    %18 = math.exp %17 : vector<16x128xf32>
    %cst_12 = arith.constant dense<0.000000e+00> : vector<16xf32>
    %19 = vector.multi_reduction <add>, %18, %cst_12 [1] : vector<16x128xf32> to vector<16xf32>
    %20 = vector.shape_cast %19 : vector<16xf32> to vector<16x1xf32>
    %21 = tpu.reciprocal %20 {approx = true} : vector<16x1xf32> -> vector<16x1xf32>
    %22 = vector.broadcast %21 : vector<16x1xf32> to vector<16x128xf32>
    %23 = arith.mulf %18, %22 : vector<16x128xf32>
    %c0_13 = arith.constant 0 : index
    %c0_14 = arith.constant 0 : index
    %24 = vector.load %arg6[%c0_13, %c0_14] : memref<16x128xf32, #tpu.memory_space<vmem>>, vector<16x128xf32>
    tpu.vector_store %arg6[%c0_13, %c0_14], %23 {strides = array<i32>} : memref<16x128xf32, #tpu.memory_space<vmem>>, vector<16x128xf32>,
    return
  }
  func.func @transform_0(%arg0: i32) -> (i32, i32) {
    %c0_i32 = arith.constant 0 : i32
    %c0_i32_0 = arith.constant 0 : i32
    return %arg0, %c0_i32 : i32, i32
  }
  func.func @transform_1(%arg0: i32) -> (i32, i32) {
    %c0_i32 = arith.constant 0 : i32
    %c0_i32_0 = arith.constant 0 : i32
    %c0_i32_1 = arith.constant 0 : i32
    return %c0_i32, %c0_i32_0 : i32, i32
  }
  func.func @transform_2(%arg0: i32) -> (i32, i32) {
    %c0_i32 = arith.constant 0 : i32
    %c0_i32_0 = arith.constant 0 : i32
    %c0_i32_1 = arith.constant 0 : i32
    return %c0_i32, %c0_i32_0 : i32, i32
  }
  func.func @transform_3(%arg0: i32) -> (i32, i32) {
    %c0_i32 = arith.constant 0 : i32
    %c0_i32_0 = arith.constant 0 : i32
    %c0_i32_1 = arith.constant 0 : i32
    return %c0_i32, %c0_i32_0 : i32, i32
  }
  func.func @transform_4(%arg0: i32) -> (i32, i32) {
    %c0_i32 = arith.constant 0 : i32
    %c0_i32_0 = arith.constant 0 : i32
    %c0_i32_1 = arith.constant 0 : i32
    return %c0_i32, %c0_i32_0 : i32, i32
  }
  func.func @transform_5(%arg0: i32) -> (i32, i32) {
    %c0_i32 = arith.constant 0 : i32
    %c0_i32_0 = arith.constant 0 : i32
    return %arg0, %c0_i32 : i32, i32
  }
  func.func @transform_6(%arg0: i32) -> (i32, i32) {
    %c0_i32 = arith.constant 0 : i32
    %c0_i32_0 = arith.constant 0 : i32
    return %arg0, %c0_i32 : i32, i32
  }
}

</mosaic_0001>

<bundles_post_ra>
// kernel: ddc_forward.3
= control target key start
LH: loop header
LB: loop body
LE: loop exit
PB: predicated region body
PF: predicated region fallthrough
CT: control target
= control target key end

     0   :  { %s286_s3 = inlined_call_operand.vmem [shape: bf16[128,128], index: 3, kind: input, shape index: {}]   ;;  %s287_s0 = inlined_call_operand.vmem [shape: f32[16,128], index: 0, kind: input, shape index: {}]   ;;  %s288_s1 = inlined_call_operand.vmem [shape: f32[1,128], index: 1, kind: input, shape index: {}]   ;;  %s289_s2 = inlined_call_operand.vmem [shape: f32[1,128], index: 2, kind: input, shape index: {}]   ;;  %s290_s4 = inlined_call_operand.vmem [shape: f32[1,128], index: 4, kind: input, shape index: {}]   ;;  %s291_s6 = inlined_call_operand.vmem [shape: f32[16,128], index: 6, kind: output, shape index: {1}]   ;;  %s292_s5 = inlined_call_operand.vmem [shape: f32[16,128], index: 5, kind: output, shape index: {0}]  }
   0x1   :  { %v188_v0 = vld [vmem:[%s286_s3 + $0x38] sm:$0xff]  ;;  %v187_v1 = vld [vmem:[%s286_s3 + $0x30] sm:$0xff]  ;;  %v22_v2 = vld [vmem:[%s287_s0] sm:$0xff] }
   0x2   :  { %107 = vmatpush.bf16.msra.mxu0 %v188_v0  ;;  %v23_v3 = vld [vmem:[%s287_s0 + $0x8] sm:$0xff]  ;;  %v189_v4 = vld [vmem:[%s288_s1] ss:$0 sm:$0xff]  ;;  %v184_v12 = vld [vmem:[%s286_s3 + $0x18] sm:$0xff] }
   0x3   :  { %v190_v5 = vld [vmem:[%s289_s2] ss:$0 sm:$0xff]  ;;  %v28_v6 = vmul.f32 %v189_v4, %v22_v2  ;;  %v29_v7 = vmul.f32 %v189_v4, %v23_v3  ;;  %v186_v8 = vld [vmem:[%s286_s3 + $0x28] sm:$0xff]  ;;  %v183_v13 = vld [vmem:[%s286_s3 + $0x10] sm:$0xff] }
   0x4   :  { %v185_v11 = vld [vmem:[%s286_s3 + $0x20] sm:$0xff]  ;;  %v182_v14 = vld [vmem:[%s286_s3 + $0x8] sm:$0xff] }
   0x5   :  { %v34_v9 = vadd.f32 %v190_v5, %v28_v6  ;;  %v35_v10 = vadd.f32 %v190_v5, %v29_v7  ;;  %v181_v15 = vld [vmem:[%s286_s3] sm:$0xff] }
   0x6   :  { %108 = vmatpush.bf16.msra.mxu0 %v187_v1  ;;  %v191_v17 = vld [vmem:[%s290_s4] ss:$0 sm:$0xff] }
   0x7   :  { %36 = vst [vmem:[%s291_s6] sm:$0xff] %v34_v9  ;;  %v38_v16 = vpack.c.bf16 %v35_v10, %v34_v9 }
   0x8   :  { %37 = vst [vmem:[%s291_s6 + $0x8] sm:$0xff] %v35_v10 }
   0xa   :  { %109 = vmatpush.bf16.msra.mxu0 %v186_v8 }
   0xe   :  { %110 = vmatpush.bf16.msra.mxu0 %v185_v11 }
  0x12   :  { %111 = vmatpush.bf16.msra.mxu0 %v184_v12 }
  0x16   :  { %112 = vmatpush.bf16.msra.mxu0 %v183_v13 }
  0x1a   :  { %113 = vmatpush.bf16.msra.mxu0 %v182_v14 }
  0x1e   :  { %114 = vmatpush.bf16.msra.mxu0 %v181_v15 }
  0x21   :  { %115 = vmatmul.bf16.vlgmr.msra.gmra.mxu0 %v38_v16 }
  0x9e   :  { %v116_v18 = vpop.f32.mrf.mxu0 }
  0x9f   :  { %v117_v19 = vadd.f32 %v191_v17, %v116_v18 }
  0xa1   :  { %121 = vmax.xlane.f32.xlu0 %v117_v19 }
  0xa6   :  { %v118_v20 = vpop.f32.mrf.mxu0 }
  0xa7   :  { %v119_v21 = vadd.f32 %v191_v17, %v118_v20 }
  0xa9   :  { %123 = vmax.xlane.f32.xlu0 %v119_v21 }
 0x114   :  { %v122_v22 = vpop.xlane.xlu0 %121 }
 0x115   :  { %v125_v23 = vsub.f32 %v117_v19, %v122_v22 }
 0x117   :  { %v127_v24 = vmul.f32 1.442695, %v125_v23 }
 0x119   :  { %192 = vpow2.f32 %v127_v24 }
 0x11c   :  { %v124_v25 = vpop.xlane.xlu0 %123 }
 0x11d   :  { %v126_v26 = vsub.f32 %v119_v21, %v124_v25 }
 0x11f   :  { %v193_v27 = vpop.eup %192  ;;  %v129_v28 = vmul.f32 1.442695, %v126_v26 }
 0x120   :  { %131 = vadd.xlane.f32.xlu1 %v193_v27 }
 0x121   :  { %194 = vpow2.f32 %v129_v28 }
 0x127   :  { %v195_v29 = vpop.eup %194 }
 0x128   :  { %133 = vadd.xlane.f32.xlu1 %v195_v29 }
 0x193   :  { %v132_v30 = vpop.xlane.xlu1 %131 }
 0x194   :  { %196 = vrcp.f32 %v132_v30 }
 0x19a   :  { %v197_v31 = vpop.eup %196 }
 0x19b   :  { %v137_v32 = vmul.f32 %v197_v31, %v193_v27  ;;  %v134_v33 = vpop.xlane.xlu1 %133 }
 0x19c   :  { %198 = vrcp.f32 %v134_v33 }
 0x19d   :  { %139 = vst [vmem:[%s292_s5] sm:$0xff] %v137_v32 }
 0x1a2   :  { %v199_v34 = vpop.eup %198 }
 0x1a3   :  { %v138_v35 = vmul.f32 %v199_v34, %v195_v29 }
 0x1a5   :  { %140 = vst [vmem:[%s292_s5 + $0x8] sm:$0xff] %v138_v35 }

// kernel: ddc_forward.2
= control target key start
LH: loop header
LB: loop body
LE: loop exit
PB: predicated region body
PF: predicated region fallthrough
CT: control target
= control target key end

     0   :  { %s927_s1 = inlined_call_operand.vmem [shape: bf16[128,128], index: 1, kind: input, shape index: {}]   ;;  %s928_s2 = inlined_call_operand.vmem [shape: f32[1,128], index: 2, kind: input, shape index: {}]   ;;  %s929_s0 = inlined_call_operand.vmem [shape: bf16[16,128], index: 0, kind: input, shape index: {}]   ;;  %s930_s4 = inlined_call_operand.vmem [shape: f32[1,128], index: 4, kind: input, shape index: {}]   ;;  %s931_s3 = inlined_call_operand.vmem [shape: bf16[128,128], index: 3, kind: input, shape index: {}]   ;;  %s932_s6 = inlined_call_operand.vmem [shape: f32[1,128], index: 6, kind: input, shape index: {}]   ;;  %s933_s5 = inlined_call_operand.vmem [shape: bf16[128,128], index: 5, kind: input, shape index: {}]   ;;  %s934_s7 = inlined_call_operand.vmem [shape: f32[16,128], index: 7, kind: output, shape index: {0}]   ;;  %s935_s8 = inlined_call_operand.vmem [shape: f32[8,128], index: 8, kind: output, shape index: {1}]  }
   0x1   :  { %v708_v0 = vld [vmem:[%s927_s1 + $0x38] sm:$0xff]  ;;  %v707_v1 = vld [vmem:[%s927_s1 + $0x30] sm:$0xff]  ;;  %v706_v2 = vld [vmem:[%s927_s1 + $0x28] sm:$0xff] }
   0x2   :  { %104 = vmatpush.bf16.msra.mxu0 %v708_v0  ;;  %v705_v3 = vld [vmem:[%s927_s1 + $0x20] sm:$0xff]  ;;  %v704_v4 = vld [vmem:[%s927_s1 + $0x18] sm:$0xff]  ;;  %v703_v5 = vld [vmem:[%s927_s1 + $0x10] sm:$0xff] }
   0x3   :  { %v702_v6 = vld [vmem:[%s927_s1 + $0x8] sm:$0xff]  ;;  %v701_v7 = vld [vmem:[%s927_s1] sm:$0xff]  ;;  %v716_v10 = vld [vmem:[%s931_s3 + $0x38] sm:$0xff] }
   0x4   :  { %v700_v8 = vld [vmem:[%s929_s0] sm:$0xff]  ;;  %275 = vmatpush.bf16.msra.mxu1 %v716_v10  ;;  %v715_v14 = vld [vmem:[%s931_s3 + $0x30] sm:$0xff]  ;;  %v714_v16 = vld [vmem:[%s931_s3 + $0x28] sm:$0xff] }
   0x5   :  { %v725_v9 = vld [vmem:[%s928_s2] ss:$0 sm:$0xff]  ;;  %v712_v27 = vld [vmem:[%s931_s3 + $0x18] sm:$0xff]  ;;  %v711_v33 = vld [vmem:[%s931_s3 + $0x10] sm:$0xff] }
   0x6   :  { %105 = vmatpush.bf16.msra.mxu0 %v707_v1  ;;  %v713_v21 = vld [vmem:[%s931_s3 + $0x20] sm:$0xff]  ;;  %v710_v41 = vld [vmem:[%s931_s3 + $0x8] sm:$0xff] }
   0x7   :  { %v709_v48 = vld [vmem:[%s931_s3] sm:$0xff] }
   0x8   :  { %276 = vmatpush.bf16.msra.mxu1 %v715_v14 }
   0xa   :  { %106 = vmatpush.bf16.msra.mxu0 %v706_v2 }
   0xc   :  { %277 = vmatpush.bf16.msra.mxu1 %v714_v16 }
   0xe   :  { %107 = vmatpush.bf16.msra.mxu0 %v705_v3 }
  0x10   :  { %278 = vmatpush.bf16.msra.mxu1 %v713_v21 }
  0x12   :  { %108 = vmatpush.bf16.msra.mxu0 %v704_v4 }
  0x14   :  { %279 = vmatpush.bf16.msra.mxu1 %v712_v27 }
  0x16   :  { %109 = vmatpush.bf16.msra.mxu0 %v703_v5 }
  0x18   :  { %280 = vmatpush.bf16.msra.mxu1 %v711_v33 }
  0x1a   :  { %110 = vmatpush.bf16.msra.mxu0 %v702_v6 }
  0x1c   :  { %281 = vmatpush.bf16.msra.mxu1 %v710_v41  ;;  %v724_v41 = vld [vmem:[%s933_s5 + $0x38] sm:$0xff] }
  0x1d   :  { %446 = vmatpush.bf16.msra.mxu2 %v724_v41 }
  0x1e   :  { %111 = vmatpush.bf16.msra.mxu0 %v701_v7 }
  0x20   :  { %282 = vmatpush.bf16.msra.mxu1 %v709_v48 }
  0x21   :  { %112 = vmatmul.bf16.vlgmr.msra.gmra.mxu0 %v700_v8 }
  0x9e   :  { %v113_v11 = vpop.f32.mrf.mxu0 }
  0x9f   :  { %v818_v12 = vadd.f32 %v725_v9, %v113_v11 }
  0xa1   :  { %v821_v13 = vmul.f32 0.70710677, %v818_v12 }
  0xa3   :  { %v122_v15 = vmul.f32 %v821_v13, %v821_v13 }
  0xa5   :  { %v123_v17 = vmin.f32 %v122_v15, 16.0 }
  0xa6   :  { %v115_v18 = vpop.f32.mrf.mxu0 }
  0xa7   :  { %v124_v19 = vmul.f32 2.1237322e-06, %v123_v17  ;;  %v831_v20 = vadd.f32 %v725_v9, %v115_v18  ;;  %v135_v22 = vmul.f32 3.8918573e-05, %v123_v17 }
  0xa9   :  { %v125_v23 = vadd.f32 0.00028619796, %v124_v19  ;;  %v837_v24 = vmul.f32 0.70710677, %v831_v20  ;;  %v136_v25 = vadd.f32 0.001143296, %v135_v22 }
  0xab   :  { %v162_v26 = vmul.f32 %v837_v24, %v837_v24  ;;  %v126_v28 = vmul.f32 %v125_v23, %v123_v17  ;;  %v137_v29 = vmul.f32 %v136_v25, %v123_v17 }
  0xad   :  { %v163_v30 = vmin.f32 %v162_v26, 16.0  ;;  %v138_v31 = vadd.f32 0.014752088, %v137_v29  ;;  %v127_v35 = vadd.f32 0.0036580483, %v126_v28 }
  0xaf   :  { %v164_v32 = vmul.f32 2.1237322e-06, %v163_v30  ;;  %v175_v34 = vmul.f32 3.8918573e-05, %v163_v30  ;;  %v139_v36 = vmul.f32 %v138_v31, %v123_v17  ;;  %v128_v43 = vmul.f32 %v127_v35, %v123_v17 }
  0xb0   :  { %v119_v35 = vmul.f32 0.5, %v831_v20  ;;  %v723_v20 = vld [vmem:[%s933_s5 + $0x30] sm:$0xff] }
  0xb1   :  { %v165_v37 = vadd.f32 0.00028619796, %v164_v32  ;;  %v176_v38 = vadd.f32 0.001143296, %v175_v34  ;;  %v140_v39 = vadd.f32 0.112945676, %v139_v36  ;;  %447 = vmatpush.bf16.msra.mxu2 %v723_v20 }
  0xb2   :  { %v129_v50 = vadd.f32 0.05243302, %v128_v43  ;;  %v118_v34 = vmul.f32 0.5, %v818_v12 }
  0xb3   :  { %v166_v40 = vmul.f32 %v165_v37, %v163_v30  ;;  %v177_v42 = vmul.f32 %v176_v38, %v163_v30  ;;  %v141_v44 = vmul.f32 %v140_v39, %v123_v17 }
  0xb4   :  { %v130_v56 = vmul.f32 %v129_v50, %v123_v17  ;;  %v721_v50 = vld [vmem:[%s933_s5 + $0x20] sm:$0xff] }
  0xb5   :  { %v167_v45 = vadd.f32 0.0036580483, %v166_v40  ;;  %v178_v46 = vadd.f32 0.014752088, %v177_v42  ;;  %v142_v47 = vadd.f32 0.4994258, %v141_v44 }
  0xb6   :  { %v131_v60 = vadd.f32 0.18741608, %v130_v56  ;;  %v722_v44 = vld [vmem:[%s933_s5 + $0x28] sm:$0xff]  ;;  %v720_v56 = vld [vmem:[%s933_s5 + $0x18] sm:$0xff] }
  0xb7   :  { %v179_v49 = vmul.f32 %v178_v46, %v163_v30  ;;  %v143_v51 = vmul.f32 %v142_v47, %v123_v17  ;;  %v168_v52 = vmul.f32 %v167_v45, %v163_v30  ;;  %448 = vmatpush.bf16.msra.mxu2 %v722_v44 }
  0xb8   :  { %v132_v1 = vmul.f32 %v131_v60, %v123_v17 }
  0xb9   :  { %v180_v53 = vadd.f32 0.112945676, %v179_v49  ;;  %v144_v54 = vadd.f32 1.0, %v143_v51  ;;  %v169_v57 = vadd.f32 0.05243302, %v168_v52 }
  0xba   :  { %v133_v7 = vadd.f32 1.1283791, %v132_v1 }
  0xbb   :  { %v181_v55 = vmul.f32 %v180_v53, %v163_v30  ;;  %728 = vrcp.f32 %v144_v54  ;;  %v170_v61 = vmul.f32 %v169_v57, %v163_v30  ;;  %v156_v4 = vand.u32 2147483648, %v144_v54  ;;  %449 = vmatpush.bf16.msra.mxu2 %v721_v50 }
  0xbc   :  { %v154_v6 = vand.u32 2147483647, %v144_v54  ;;  %vm150_vm1 = vweird.f32 %v144_v54  ;;  %v134_v16 = vmul.f32 %v133_v7, %v821_v13  ;;  %v718_v7 = vld [vmem:[%s933_s5 + $0x8] sm:$0xff] }
  0xbd   :  { %v182_v58 = vadd.f32 0.4994258, %v181_v55  ;;  %v171_v2 = vadd.f32 0.18741608, %v170_v61  ;;  %v157_v11 = vor.u32 1.1754944e-38, %v156_v4 }
  0xbe   :  { %vm155_vm3 = vcmp.eq.f32.partialorder %v154_v6, 8.507059e+37 }
  0xbf   :  { %v183_v59 = vmul.f32 %v182_v58, %v163_v30  ;;  %v172_v9 = vmul.f32 %v171_v2, %v163_v30  ;;  %450 = vmatpush.bf16.msra.mxu2 %v720_v56 }
  0xc1   :  { %v184_v62 = vadd.f32 1.0, %v183_v59  ;;  %v729_v63 = vpop.eup %728  ;;  %v173_v19 = vadd.f32 1.1283791, %v172_v9 }
  0xc2   :  { %v146_v0 = vmul.f32 %v729_v63, %v144_v54  ;;  %vm151_vm0 = vweird.f32 %v729_v63 }
  0xc3   :  { %730 = vrcp.f32 %v184_v62  ;;  %vm152_vm2 = vmor %vm150_vm1, %vm151_vm0  ;;  %v196_v21 = vand.u32 2147483648, %v184_v62  ;;  %v194_v25 = vand.u32 2147483647, %v184_v62  ;;  %vm190_vm5 = vweird.f32 %v184_v62 }
  0xc4   :  { %v147_v3 = vsub.f32 1.0, %v146_v0  ;;  %v174_v28 = vmul.f32 %v173_v19, %v837_v24  ;;  %v726_v24 = vld [vmem:[%s930_s4] ss:$0 sm:$0xff] }
  0xc5   :  { %v197_v27 = vor.u32 1.1754944e-38, %v196_v21  ;;  %vm195_vm7 = vcmp.eq.f32.partialorder %v194_v25, 8.507059e+37 }
  0xc6   :  { %v148_v5 = vmul.f32 %v729_v63, %v147_v3 }
  0xc8   :  { %v149_v10 = vadd.f32 %v729_v63, %v148_v5 }
  0xc9   :  { %v731_v8 = vpop.eup %730 }
  0xca   :  { %v186_v14 = vmul.f32 %v731_v8, %v184_v62  ;;  %v153_v15 = vsel %vm152_vm2, %v729_v63, %v149_v10  ;;  %vm191_vm4 = vweird.f32 %v731_v8  ;;  %v719_v63 = vld [vmem:[%s933_s5 + $0x10] sm:$0xff] }
  0xcb   :  { %v158_v18 = vsel %vm155_vm3, %v157_v11, %v153_v15  ;;  %vm192_vm6 = vmor %vm190_vm5, %vm191_vm4  ;;  %451 = vmatpush.bf16.msra.mxu2 %v719_v63 }
  0xcc   :  { %v187_v17 = vsub.f32 1.0, %v186_v14  ;;  %v159_v22 = vmul.f32 %v158_v18, %v134_v16  ;;  %v717_v16 = vld [vmem:[%s933_s5] sm:$0xff] }
  0xce   :  { %v188_v23 = vmul.f32 %v731_v8, %v187_v17  ;;  %v630_v29 = vclamps-f32 %v159_v22, 1.0 }
  0xcf   :  { %452 = vmatpush.bf16.msra.mxu2 %v718_v7 }
  0xd0   :  { %v189_v26 = vadd.f32 %v731_v8, %v188_v23  ;;  %v202_v33 = vadd.f32 1.0, %v630_v29 }
  0xd2   :  { %v193_v30 = vsel %vm192_vm6, %v731_v8, %v189_v26  ;;  %v204_v37 = vmul.f32 %v202_v33, %v118_v34 }
  0xd3   :  { %v198_v31 = vsel %vm195_vm7, %v197_v27, %v193_v30  ;;  %453 = vmatpush.bf16.msra.mxu2 %v717_v16 }
  0xd4   :  { %v199_v32 = vmul.f32 %v198_v31, %v174_v28 }
  0xd6   :  { %v631_v13 = vclamps-f32 %v199_v32, 1.0 }
  0xd8   :  { %v203_v36 = vadd.f32 1.0, %v631_v13 }
  0xda   :  { %v205_v38 = vmul.f32 %v203_v36, %v119_v35 }
  0xdc   :  { %v206_v39 = vpack.c.bf16 %v205_v38, %v204_v37 }
  0xde   :  { %283 = vmatmul.bf16.vlgmr.msra.gmra.mxu1 %v206_v39 }
 0x15b   :  { %v284_v40 = vpop.f32.mrf.mxu1 }
 0x15c   :  { %v863_v42 = vadd.f32 %v726_v24, %v284_v40 }
 0x15e   :  { %v866_v12 = vmul.f32 0.70710677, %v863_v42 }
 0x160   :  { %v293_v43 = vmul.f32 %v866_v12, %v866_v12 }
 0x162   :  { %v294_v45 = vmin.f32 %v293_v43, 16.0 }
 0x163   :  { %v286_v46 = vpop.f32.mrf.mxu1 }
 0x164   :  { %v295_v47 = vmul.f32 2.1237322e-06, %v294_v45  ;;  %v876_v48 = vadd.f32 %v726_v24, %v286_v46  ;;  %v306_v49 = vmul.f32 3.8918573e-05, %v294_v45 }
 0x166   :  { %v296_v51 = vadd.f32 0.00028619796, %v295_v47  ;;  %v882_v52 = vmul.f32 0.70710677, %v876_v48  ;;  %v307_v53 = vadd.f32 0.001143296, %v306_v49 }
 0x167   :  { %v290_v63 = vmul.f32 0.5, %v876_v48 }
 0x168   :  { %v333_v54 = vmul.f32 %v882_v52, %v882_v52  ;;  %v297_v55 = vmul.f32 %v296_v51, %v294_v45  ;;  %v308_v57 = vmul.f32 %v307_v53, %v294_v45 }
 0x16a   :  { %v334_v58 = vmin.f32 %v333_v54, 16.0  ;;  %v309_v59 = vadd.f32 0.014752088, %v308_v57  ;;  %v298_v62 = vadd.f32 0.0036580483, %v297_v55 }
 0x16c   :  { %v335_v60 = vmul.f32 2.1237322e-06, %v334_v58  ;;  %v346_v61 = vmul.f32 3.8918573e-05, %v334_v58  ;;  %v310_v0 = vmul.f32 %v309_v59, %v294_v45  ;;  %v299_v6 = vmul.f32 %v298_v62, %v294_v45 }
 0x16d   :  { %v289_v62 = vmul.f32 0.5, %v863_v42 }
 0x16e   :  { %v336_v1 = vadd.f32 0.00028619796, %v335_v60  ;;  %v347_v2 = vadd.f32 0.001143296, %v346_v61  ;;  %v311_v3 = vadd.f32 0.112945676, %v310_v0 }
 0x16f   :  { %v300_v15 = vadd.f32 0.05243302, %v299_v6 }
 0x170   :  { %v337_v4 = vmul.f32 %v336_v1, %v334_v58  ;;  %v348_v5 = vmul.f32 %v347_v2, %v334_v58  ;;  %v312_v8 = vmul.f32 %v311_v3, %v294_v45 }
 0x171   :  { %v301_v23 = vmul.f32 %v300_v15, %v294_v45 }
 0x172   :  { %v338_v9 = vadd.f32 0.0036580483, %v337_v4  ;;  %v349_v10 = vadd.f32 0.014752088, %v348_v5  ;;  %v313_v11 = vadd.f32 0.4994258, %v312_v8 }
 0x173   :  { %v302_v28 = vadd.f32 0.18741608, %v301_v23 }
 0x174   :  { %v350_v14 = vmul.f32 %v349_v10, %v334_v58  ;;  %v314_v18 = vmul.f32 %v313_v11, %v294_v45  ;;  %v339_v17 = vmul.f32 %v338_v9, %v334_v58 }
 0x175   :  { %v303_v13 = vmul.f32 %v302_v28, %v294_v45 }
 0x176   :  { %v351_v19 = vadd.f32 0.112945676, %v350_v14  ;;  %v315_v21 = vadd.f32 1.0, %v314_v18  ;;  %v340_v25 = vadd.f32 0.05243302, %v339_v17 }
 0x177   :  { %v304_v38 = vadd.f32 1.1283791, %v303_v13 }
 0x178   :  { %v352_v22 = vmul.f32 %v351_v19, %v334_v58  ;;  %732 = vrcp.f32 %v315_v21  ;;  %v341_v29 = vmul.f32 %v340_v25, %v334_v58  ;;  %v327_v35 = vand.u32 2147483648, %v315_v21 }
 0x179   :  { %v325_v37 = vand.u32 2147483647, %v315_v21  ;;  %vm321_vm9 = vweird.f32 %v315_v21  ;;  %v305_v44 = vmul.f32 %v304_v38, %v866_v12 }
 0x17a   :  { %v353_v26 = vadd.f32 0.4994258, %v352_v22  ;;  %v342_v33 = vadd.f32 0.18741608, %v341_v29  ;;  %v328_v41 = vor.u32 1.1754944e-38, %v327_v35 }
 0x17b   :  { %vm326_vm11 = vcmp.eq.f32.partialorder %v325_v37, 8.507059e+37 }
 0x17c   :  { %v354_v27 = vmul.f32 %v353_v26, %v334_v58  ;;  %v343_v24 = vmul.f32 %v342_v33, %v334_v58 }
 0x17e   :  { %v355_v30 = vadd.f32 1.0, %v354_v27  ;;  %v733_v31 = vpop.eup %732  ;;  %v344_v47 = vadd.f32 1.1283791, %v343_v24 }
 0x17f   :  { %v317_v32 = vmul.f32 %v733_v31, %v315_v21  ;;  %vm322_vm8 = vweird.f32 %v733_v31 }
 0x180   :  { %734 = vrcp.f32 %v355_v30  ;;  %vm323_vm10 = vmor %vm321_vm9, %vm322_vm8  ;;  %v367_v49 = vand.u32 2147483648, %v355_v30  ;;  %v365_v53 = vand.u32 2147483647, %v355_v30  ;;  %vm361_vm13 = vweird.f32 %v355_v30 }
 0x181   :  { %v318_v34 = vsub.f32 1.0, %v317_v32  ;;  %v345_v56 = vmul.f32 %v344_v47, %v882_v52  ;;  %v727_v52 = vld [vmem:[%s932_s6] ss:$0 sm:$0xff] }
 0x182   :  { %v368_v55 = vor.u32 1.1754944e-38, %v367_v49  ;;  %vm366_vm15 = vcmp.eq.f32.partialorder %v365_v53, 8.507059e+37 }
 0x183   :  { %v319_v36 = vmul.f32 %v733_v31, %v318_v34 }
 0x185   :  { %v320_v40 = vadd.f32 %v733_v31, %v319_v36 }
 0x186   :  { %v735_v39 = vpop.eup %734 }
 0x187   :  { %v357_v20 = vmul.f32 %v735_v39, %v355_v30  ;;  %v324_v43 = vsel %vm323_vm10, %v733_v31, %v320_v40  ;;  %vm362_vm12 = vweird.f32 %v735_v39 }
 0x188   :  { %v329_v46 = vsel %vm326_vm11, %v328_v41, %v324_v43  ;;  %vm363_vm14 = vmor %vm361_vm13, %vm362_vm12 }
 0x189   :  { %v358_v45 = vsub.f32 1.0, %v357_v20  ;;  %v330_v50 = vmul.f32 %v329_v46, %v305_v44 }
 0x18b   :  { %v359_v51 = vmul.f32 %v735_v39, %v358_v45  ;;  %v664_v57 = vclamps-f32 %v330_v50, 1.0 }
 0x18d   :  { %v360_v54 = vadd.f32 %v735_v39, %v359_v51  ;;  %v373_v61 = vadd.f32 1.0, %v664_v57 }
 0x18f   :  { %v364_v58 = vsel %vm363_vm14, %v735_v39, %v360_v54  ;;  %v375_v1 = vmul.f32 %v373_v61, %v289_v62 }
 0x190   :  { %v369_v59 = vsel %vm366_vm15, %v368_v55, %v364_v58 }
 0x191   :  { %v370_v60 = vmul.f32 %v369_v59, %v345_v56 }
 0x193   :  { %v665_v12 = vclamps-f32 %v370_v60, 1.0 }
 0x195   :  { %v374_v0 = vadd.f32 1.0, %v665_v12 }
 0x197   :  { %v376_v2 = vmul.f32 %v374_v0, %v290_v63 }
 0x199   :  { %v377_v3 = vpack.c.bf16 %v376_v2, %v375_v1 }
 0x19b   :  { %454 = vmatmul.bf16.vlgmr.msra.gmra.mxu2 %v377_v3 }
 0x21e   :  { %v455_v4 = vpop.f32.mrf.mxu2 }
 0x21f   :  { %v905_v5 = vadd.f32 %v727_v52, %v455_v4 }
 0x221   :  { %v462_v6 = vmul.f32 0.70710677, %v905_v5 }
 0x223   :  { %v464_v7 = vmul.f32 %v462_v6, %v462_v6 }
 0x225   :  { %v465_v8 = vmin.f32 %v464_v7, 16.0 }
 0x226   :  { %v457_v9 = vpop.f32.mrf.mxu2 }
 0x227   :  { %v466_v42 = vmul.f32 2.1237322e-06, %v465_v8  ;;  %v477_v10 = vmul.f32 3.8918573e-05, %v465_v8  ;;  %v908_v48 = vadd.f32 %v727_v52, %v457_v9 }
 0x229   :  { %v467_v11 = vadd.f32 0.00028619796, %v466_v42  ;;  %v478_v14 = vadd.f32 0.001143296, %v477_v10  ;;  %v911_v15 = vmul.f32 0.70710677, %v908_v48 }
 0x22a   :  { %v460_v10 = vmul.f32 0.5, %v905_v5 }
 0x22b   :  { %v468_v16 = vmul.f32 %v467_v11, %v465_v8  ;;  %v479_v18 = vmul.f32 %v478_v14, %v465_v8  ;;  %v504_v17 = vmul.f32 %v911_v15, %v911_v15 }
 0x22d   :  { %v480_v19 = vadd.f32 0.014752088, %v479_v18  ;;  %v469_v21 = vadd.f32 0.0036580483, %v468_v16  ;;  %v505_v22 = vmin.f32 %v504_v17, 16.0 }
 0x22f   :  { %v481_v23 = vmul.f32 %v480_v19, %v465_v8  ;;  %v506_v25 = vmul.f32 2.1237322e-06, %v505_v22  ;;  %v517_v26 = vmul.f32 3.8918573e-05, %v505_v22  ;;  %v470_v28 = vmul.f32 %v469_v21, %v465_v8 }
 0x231   :  { %v482_v27 = vadd.f32 0.112945676, %v481_v23  ;;  %v507_v29 = vadd.f32 0.00028619796, %v506_v25  ;;  %v518_v30 = vadd.f32 0.001143296, %v517_v26 }
 0x232   :  { %v471_v34 = vadd.f32 0.05243302, %v470_v28  ;;  %v461_v23 = vmul.f32 0.5, %v908_v48 }
 0x233   :  { %v483_v31 = vmul.f32 %v482_v27, %v465_v8  ;;  %v508_v32 = vmul.f32 %v507_v29, %v505_v22  ;;  %v519_v13 = vmul.f32 %v518_v30, %v505_v22 }
 0x234   :  { %v472_v24 = vmul.f32 %v471_v34, %v465_v8 }
 0x235   :  { %v484_v33 = vadd.f32 0.4994258, %v483_v31  ;;  %v520_v35 = vadd.f32 0.014752088, %v519_v13  ;;  %v509_v37 = vadd.f32 0.0036580483, %v508_v32  ;;  %v550_v13 = vlaneseq }
 0x236   :  { %v473_v43 = vadd.f32 0.18741608, %v472_v24 }
 0x237   :  { %v485_v36 = vmul.f32 %v484_v33, %v465_v8  ;;  %v521_v38 = vmul.f32 %v520_v35, %v505_v22  ;;  %v510_v41 = vmul.f32 %v509_v37, %v505_v22  ;;  %v551_v48 = vshrl.u32 %v550_v13, 7 }
 0x238   :  { %v474_v49 = vmul.f32 %v473_v43, %v465_v8 }
 0x239   :  { %v486_v39 = vadd.f32 1.0, %v485_v36  ;;  %v522_v40 = vadd.f32 0.112945676, %v521_v38  ;;  %v511_v46 = vadd.f32 0.05243302, %v510_v41  ;;  %vm582_vm8 = vcmp.eq.s32.totalorder %v551_v48, 1 }
 0x23a   :  { %v475_v56 = vadd.f32 1.1283791, %v474_v49  ;;  %vm581_vm9 = vcmp.eq.s32.totalorder %v551_v48, 0 }
 0x23b   :  { %736 = vrcp.f32 %v486_v39  ;;  %v523_v20 = vmul.f32 %v522_v40, %v505_v22  ;;  %v512_v53 = vmul.f32 %v511_v46, %v505_v22  ;;  %v498_v55 = vand.u32 2147483648, %v486_v39 }
 0x23c   :  { %v496_v58 = vand.u32 2147483647, %v486_v39  ;;  %vm492_vm1 = vweird.f32 %v486_v39  ;;  %v476_v62 = vmul.f32 %v475_v56, %v462_v6 }
 0x23d   :  { %v524_v44 = vadd.f32 0.4994258, %v523_v20  ;;  %v513_v59 = vadd.f32 0.18741608, %v512_v53  ;;  %v499_v12 = vor.u32 1.1754944e-38, %v498_v55 }
 0x23e   :  { %vm497_vm3 = vcmp.eq.f32.partialorder %v496_v58, 8.507059e+37 }
 0x23f   :  { %v525_v45 = vmul.f32 %v524_v44, %v505_v22  ;;  %v514_v1 = vmul.f32 %v513_v59, %v505_v22 }
 0x241   :  { %v737_v47 = vpop.eup %736  ;;  %v526_v51 = vadd.f32 1.0, %v525_v45  ;;  %v515_v8 = vadd.f32 1.1283791, %v514_v1 }
 0x242   :  { %v488_v50 = vmul.f32 %v737_v47, %v486_v39  ;;  %vm493_vm0 = vweird.f32 %v737_v47 }
 0x243   :  { %738 = vrcp.f32 %v526_v51  ;;  %vm494_vm2 = vmor %vm492_vm1, %vm493_vm0  ;;  %v538_v7 = vand.u32 2147483648, %v526_v51  ;;  %v536_v42 = vand.u32 2147483647, %v526_v51  ;;  %vm532_vm5 = vweird.f32 %v526_v51 }
 0x244   :  { %v489_v54 = vsub.f32 1.0, %v488_v50  ;;  %v516_v18 = vmul.f32 %v515_v8, %v911_v15 }
 0x245   :  { %v539_v6 = vor.u32 1.1754944e-38, %v538_v7  ;;  %vm537_vm7 = vcmp.eq.f32.partialorder %v536_v42, 8.507059e+37 }
 0x246   :  { %v490_v57 = vmul.f32 %v737_v47, %v489_v54 }
 0x248   :  { %v491_v60 = vadd.f32 %v737_v47, %v490_v57 }
 0x249   :  { %v739_v61 = vpop.eup %738 }
 0x24a   :  { %v495_v63 = vsel %vm494_vm2, %v737_v47, %v491_v60  ;;  %v528_v2 = vmul.f32 %v739_v61, %v526_v51  ;;  %vm533_vm4 = vweird.f32 %v739_v61 }
 0x24b   :  { %v500_v0 = vsel %vm497_vm3, %v499_v12, %v495_v63  ;;  %vm534_vm6 = vmor %vm532_vm5, %vm533_vm4 }
 0x24c   :  { %v501_v3 = vmul.f32 %v500_v0, %v476_v62  ;;  %v529_v52 = vsub.f32 1.0, %v528_v2 }
 0x24e   :  { %v698_v4 = vclamps-f32 %v501_v3, 1.0  ;;  %v530_v9 = vmul.f32 %v739_v61, %v529_v52 }
 0x250   :  { %v544_v11 = vadd.f32 1.0, %v698_v4  ;;  %v531_v14 = vadd.f32 %v739_v61, %v530_v9 }
 0x252   :  { %v546_v16 = vmul.f32 %v544_v11, %v460_v10  ;;  %v535_v17 = vsel %vm534_vm6, %v739_v61, %v531_v14 }
 0x253   :  { %v540_v19 = vsel %vm537_vm7, %v539_v6, %v535_v17 }
 0x254   :  { %548 = vst [vmem:[%s934_s7] sm:$0xff] %v546_v16  ;;  %v541_v21 = vmul.f32 %v540_v19, %v516_v18  ;;  %v572_v27 = vmul.f32 %v546_v16, %v546_v16 }
 0x256   :  { %v699_v22 = vclamps-f32 %v541_v21, 1.0 }
 0x258   :  { %v545_v5 = vadd.f32 1.0, %v699_v22 }
 0x25a   :  { %v547_v25 = vmul.f32 %v545_v5, %v461_v23 }
 0x25c   :  { %549 = vst [vmem:[%s934_s7 + $0x8] sm:$0xff] %v547_v25  ;;  %v564_v26 = vmul.f32 0.0, %v547_v25 }
 0x25e   :  { %v565_v15 = vadd.f32 %v564_v26, %v546_v16  ;;  %v573_v28 = vmul.f32 %v564_v26, %v547_v25 }
 0x260   :  { %v566_v29 = vrot.slane %v565_v15, 4  ;;  %v574_v30 = vadd.f32 %v573_v28, %v572_v27 }
 0x262   :  { %v567_v31 = vadd.f32 %v566_v29, %v565_v15  ;;  %v575_v32 = vrot.slane %v574_v30, 4 }
 0x264   :  { %v568_v33 = vrot.slane %v567_v31, 2  ;;  %v576_v34 = vadd.f32 %v575_v32, %v574_v30 }
 0x266   :  { %v569_v35 = vadd.f32 %v568_v33, %v567_v31  ;;  %v577_v36 = vrot.slane %v576_v34, 2 }
 0x268   :  { %v578_v37 = vadd.f32 %v577_v36, %v576_v34  ;;  %v570_v38 = vrot.slane %v569_v35, 1 }
 0x26a   :  { %v579_v39 = vrot.slane %v578_v37, 1  ;;  %v571_v40 = vadd.f32 %v570_v38, %v569_v35 }
 0x26c   :  { %v580_v24 = vadd.f32 %v579_v39, %v578_v37 }
 0x26e   :  { %v583_v41 = vsel %vm582_vm8, %v580_v24, 0.0 }
 0x26f   :  { %v584_v20 = vsel %vm581_vm9, %v571_v40, %v583_v41 }
 0x270   :  { %585 = vst [vmem:[%s935_s8] sm:$0xff] %v584_v20 }

</bundles_post_ra>
